<compile_context>
chip_gen: v7x
topology: tpu7x:2x2x1
jax: 0.10.0
libtpu: 0.0.40
codegen_flags: <defaults>
</compile_context>

<pallas_src>
import functools

import jax
import jax.numpy as jnp
from jax import lax
from jax.experimental import pallas as pl
from jax.experimental.pallas import tpu as pltpu


def _round_up(v, m):
    return ((v + m - 1) // m) * m


def _choose_tile(dim, target, mult):
    """Largest tile <= target that divides dim and is a multiple of mult."""
    if dim <= target:
        return dim
    best = mult
    d = mult
    while d <= target:
        if dim % d == 0:
            best = d
        d += mult
    return best


# ----------------------------------------------------------------------------
# Tiled matmul + bias kernel (time-parallel projections)
# ----------------------------------------------------------------------------
def _matmul_bias_kernel(x_ref, w_ref, b_ref, o_ref, acc_ref):
    k = pl.program_id(2)

    @pl.when(k == 0)
    def _():
        acc_ref[...] = jnp.zeros_like(acc_ref)

    acc_ref[...] += jnp.dot(x_ref[...], w_ref[...],
                            preferred_element_type=jnp.float32)

    @pl.when(k == pl.num_programs(2) - 1)
    def _():
        o_ref[...] = (acc_ref[...] + b_ref[...]).astype(o_ref.dtype)


def pallas_linear(x, w, b, out_dtype=jnp.float32, tm=512, tn=512, tk=512):
    """(M, K) @ (K, N) + b.  Caller pre-pads: M%8==0, K%128==0, N%128==0,
    so no wrapper-side pad/slice copies are made here."""
    M, K = x.shape
    K2, N = w.shape
    assert K == K2 and M % 8 == 0 and K % 128 == 0 and N % 128 == 0

    tm = _choose_tile(M, tm, 8)
    tn = _choose_tile(N, tn, 128)
    tk = _choose_tile(K, tk, 128)

    b2 = b.astype(jnp.float32).reshape(1, N)
    cost = pl.CostEstimate(
        flops=2 * M * N * K,
        transcendentals=0,
        bytes_accessed=(M * K * x.dtype.itemsize + K * N * w.dtype.itemsize
                        + M * N * jnp.dtype(out_dtype).itemsize))

    return pl.pallas_call(
        _matmul_bias_kernel,
        out_shape=jax.ShapeDtypeStruct((M, N), out_dtype),
        grid_spec=pltpu.PrefetchScalarGridSpec(
            num_scalar_prefetch=0,
            grid=(M // tm, N // tn, K // tk),
            in_specs=[pl.BlockSpec((tm, tk), lambda i, j, k: (i, k)),
                      pl.BlockSpec((tk, tn), lambda i, j, k: (k, j)),
                      pl.BlockSpec((1, tn), lambda i, j, k: (0, j))],
            out_specs=pl.BlockSpec((tm, tn), lambda i, j, k: (i, j)),
            scratch_shapes=[pltpu.VMEM((tm, tn), jnp.float32)]),
        compiler_params=pltpu.CompilerParams(
            dimension_semantics=("parallel", "parallel", "arbitrary")),
        cost_estimate=cost,
    )(x, w, b2)


# ----------------------------------------------------------------------------
# Sequential LSTM recurrence kernel (h/c in VMEM, W_hh resident, T-blocked IO)
# ----------------------------------------------------------------------------
def _lstm_recurrence_kernel(xg_ref, whh_ref, h_out_ref, h_sc, c_sc, *, hp):
    to = pl.program_id(0)
    ti = pl.program_id(1)

    @pl.when(jnp.logical_and(to == 0, ti == 0))
    def _():
        h_sc[...] = jnp.zeros_like(h_sc)
        c_sc[...] = jnp.zeros_like(c_sc)

    # gates = x@W_ih^T + b (precomputed, bf16) + h_prev @ W_hh^T  (f32 acc)
    gates = xg_ref[ti].astype(jnp.float32) + jnp.dot(
        h_sc[...].astype(jnp.bfloat16), whh_ref[...],
        preferred_element_type=jnp.float32)

    # PyTorch gate order i, f, g, o; gate slices are 128-lane aligned (hp%128==0)
    i = jax.nn.sigmoid(gates[:, 0 * hp:1 * hp])
    f = jax.nn.sigmoid(gates[:, 1 * hp:2 * hp])
    g = jnp.tanh(gates[:, 2 * hp:3 * hp])
    o = jax.nn.sigmoid(gates[:, 3 * hp:4 * hp])

    c = f * c_sc[...] + i * g
    h = o * jnp.tanh(c)
    c_sc[...] = c
    h_sc[...] = h
    h_out_ref[ti] = h.astype(h_out_ref.dtype)


def pallas_lstm_recurrence(x_gates, w_hh, *, time_block=32):
    """x_gates: (T, Bp, 4*Hp) bf16 (input projection incl. bias, gate-blocked).
    w_hh: (Hp, 4*Hp) bf16.  Returns h_seq: (T, Bp, Hp) bf16."""
    T, Bp, G4 = x_gates.shape
    Hp = G4 // 4
    assert w_hh.shape == (Hp, G4) and Bp % 8 == 0 and Hp % 128 == 0

    # Pick a time slab Tt | T so streamed input/output VMEM stays bounded
    # regardless of T (double-buffered slabs).
    per_step = Bp * (4 * Hp + Hp) * 2          # bf16 xg + h_out bytes / step
    tt = 1
    for cand in range(1, min(T, time_block) + 1):
        if T % cand == 0 and cand * per_step * 2 <= (8 << 20):
            tt = cand

    # VMEM budget: resident W_hh (single-buffered) + double-buffered IO slabs
    # + h/c scratch + gate intermediates, with headroom.
    whh_bytes = Hp * 4 * Hp * 2
    io_bytes = 2 * tt * Bp * 4 * Hp * 2 + 2 * tt * Bp * Hp * 2
    scratch_bytes = 2 * Bp * Hp * 4 + Bp * 4 * Hp * 4
    vmem_limit = int(min(max(1.5 * (whh_bytes + io_bytes + scratch_bytes)
                             + (2 << 20), 16 << 20), 100 << 20))

    cost = pl.CostEstimate(
        flops=2 * T * Bp * Hp * 4 * Hp,
        transcendentals=5 * T * Bp * Hp,
        bytes_accessed=T * Bp * 4 * Hp * 2 + whh_bytes + T * Bp * Hp * 2)

    return pl.pallas_call(
        functools.partial(_lstm_recurrence_kernel, hp=Hp),
        out_shape=jax.ShapeDtypeStruct((T, Bp, Hp), jnp.bfloat16),
        grid_spec=pltpu.PrefetchScalarGridSpec(
            num_scalar_prefetch=0,
            grid=(T // tt, tt),
            in_specs=[
                # streamed, time-blocked input-projection slab
                pl.BlockSpec((tt, Bp, 4 * Hp), lambda to, ti: (to, 0, 0)),
                # whole W_hh resident in VMEM (no pipelining -> single buffer)
                pl.BlockSpec(memory_space=pltpu.MemorySpace.VMEM),
            ],
            out_specs=pl.BlockSpec((tt, Bp, Hp), lambda to, ti: (to, 0, 0)),
            scratch_shapes=[pltpu.VMEM((Bp, Hp), jnp.float32),   # h
                            pltpu.VMEM((Bp, Hp), jnp.float32)]), # c
        compiler_params=pltpu.CompilerParams(
            dimension_semantics=("arbitrary", "arbitrary"),
            vmem_limit_bytes=vmem_limit),
        cost_estimate=cost,
    )(x_gates, w_hh)


# ----------------------------------------------------------------------------
# Params: init (PyTorch-like) and packing into padded, gate-blocked layout
# ----------------------------------------------------------------------------
def init_params(key, d_in, hidden, d_out):
    ks = jax.random.split(key, 5)
    s = hidden ** -0.5

    def u(k, shape):
        return jax.random.uniform(k, shape, jnp.float32, -s, s)

    return dict(
        w_ih_t=u(ks[0], (d_in, 4 * hidden)),     # weight_ih_l0^T
        w_hh_t=u(ks[1], (hidden, 4 * hidden)),   # weight_hh_l0^T
        b_gates=u(ks[2], (4 * hidden,)),         # b_ih + b_hh folded
        w_out_t=u(ks[3], (hidden, d_out)),       # linear.weight^T
        b_out=u(ks[4], (d_out,)),                # linear.bias
    )


def pack_params(params, d_in, hidden, d_out):
    """Pad to TPU-friendly shapes once, outside jit.
    Gates are placed at column offsets k*Hp (zero padding keeps the padded
    hidden lanes exactly zero through the recurrence)."""
    H = hidden
    Hp = _round_up(H, 128)
    Dp = _round_up(d_in, 128)
    Op = _round_up(d_out, 128)

    w_ih = jnp.zeros((Dp, 4 * Hp), jnp.bfloat16)
    w_hh = jnp.zeros((Hp, 4 * Hp), jnp.bfloat16)
    b_g = jnp.zeros((4 * Hp,), jnp.float32)
    for k in range(4):
        w_ih = w_ih.at[:d_in, k * Hp:k * Hp + H].set(
            params["w_ih_t"][:, k * H:(k + 1) * H].astype(jnp.bfloat16))
        w_hh = w_hh.at[:H, k * Hp:k * Hp + H].set(
            params["w_hh_t"][:, k * H:(k + 1) * H].astype(jnp.bfloat16))
        b_g = b_g.at[k * Hp:k * Hp + H].set(
            params["b_gates"][k * H:(k + 1) * H].astype(jnp.float32))

    w_out = jnp.zeros((Hp, Op), jnp.bfloat16).at[:H, :d_out].set(
        params["w_out_t"].astype(jnp.bfloat16))
    b_out = jnp.zeros((Op,), jnp.float32).at[:d_out].set(
        params["b_out"].astype(jnp.float32))

    return dict(w_ih=w_ih, w_hh=w_hh, b_gates=b_g, w_out=w_out, b_out=b_out)


# ----------------------------------------------------------------------------
# Forward
# ----------------------------------------------------------------------------
def lstm_forward(packed, x, *, d_out):
    """x: (T, B, input_size) f32 -> (T, B, output_size) f32."""
    T, B, D = x.shape
    Dp = packed["w_ih"].shape[0]
    Hp = packed["w_hh"].shape[0]
    Op = packed["w_out"].shape[1]
    Bp = _round_up(B, 8)

    # Pad batch/feature once (sublane/lane alignment) and cast operands to bf16.
    if B == Bp and D == Dp:
        xp = x.astype(jnp.bfloat16)
    else:
        xp = jnp.zeros((T, Bp, Dp), jnp.bfloat16).at[:, :B, :D].set(
            x.astype(jnp.bfloat16))

    # 1) Time-parallel input projection (kept bf16 to halve HBM traffic).
    x_gates = pallas_linear(xp.reshape(T * Bp, Dp), packed["w_ih"],
                            packed["b_gates"], out_dtype=jnp.bfloat16)
    x_gates = x_gates.reshape(T, Bp, 4 * Hp)

    # 2) Sequential recurrence (h/c + W_hh VMEM-resident, T-blocked IO).
    h_seq = pallas_lstm_recurrence(x_gates, packed["w_hh"])

    # 3) Time-parallel output projection (amortizes MXU over T*Bp rows).
    y = pallas_linear(h_seq.reshape(T * Bp, Hp), packed["w_out"],
                      packed["b_out"], out_dtype=jnp.float32)
    y = y.reshape(T, Bp, Op)
    return y[:, :B, :d_out]


def lstm_reference(params, x):
    """Pure-JAX f32 reference (mirrors torch.nn.LSTM + Linear)."""
    T, B, D = x.shape
    H = params["w_hh_t"].shape[0]

    def step(carry, xt):
        h, c = carry
        gates = xt @ params["w_ih_t"] + params["b_gates"] + h @ params["w_hh_t"]
        i = jax.nn.sigmoid(gates[:, 0 * H:1 * H])
        f = jax.nn.sigmoid(gates[:, 1 * H:2 * H])
        g = jnp.tanh(gates[:, 2 * H:3 * H])
        o = jax.nn.sigmoid(gates[:, 3 * H:4 * H])
        c = f * c + i * g
        h = o * jnp.tanh(c)
        return (h, c), h

    init = (jnp.zeros((B, H), jnp.float32), jnp.zeros((B, H), jnp.float32))
    _, hs = lax.scan(step, init, x)
    return hs @ params["w_out_t"] + params["b_out"]


if __name__ == "__main__":
    key = jax.random.PRNGKey(0)
    k_in, k_par = jax.random.split(key)

    T, B, D_IN, HID, D_OUT = 8, 4, 32, 32, 16   # (seq, batch, in, hidden, out)
    x = jax.random.normal(k_in, (T, B, D_IN), dtype=jnp.float32)
    params = init_params(k_par, D_IN, HID, D_OUT)
    packed = pack_params(params, D_IN, HID, D_OUT)

    fwd = jax.jit(functools.partial(lstm_forward, d_out=D_OUT))
    out = jax.block_until_ready(fwd(packed, x))

    assert out.shape == (T, B, D_OUT), out.shape
    assert bool(jnp.all(jnp.isfinite(out)))

    ref = lstm_reference(params, x)
    err = float(jnp.max(jnp.abs(out - ref)))
    assert err < 5e-2, f"max abs err {err}"   # bf16-operand tolerance

    print("KERNEL_OK")
</pallas_src>

<mosaic_0001>
module attributes {stable_mosaic.version = 11 : i64} {
  func.func @_lstm_recurrence_kernel(%arg0: i32, %arg1: i32, %arg2: memref<8x8x512xbf16, #tpu.memory_space<vmem>>, %arg3: memref<128x512xbf16, #tpu.memory_space<vmem>>, %arg4: memref<8x8x128xbf16, #tpu.memory_space<vmem>>, %arg5: memref<8x128xf32, #tpu.memory_space<vmem>>, %arg6: memref<8x128xf32, #tpu.memory_space<vmem>>) attributes {dimension_semantics = [#tpu.dimension_semantics<arbitrary>, #tpu.dimension_semantics<arbitrary>], iteration_bounds = array<i64: 1, 8>, scalar_prefetch = 0 : i64, scratch_operands = 2 : i64, tpu.core_type = #tpu.core_type<tc>, window_params = [{transform_indices = @transform_0, window_bounds = array<i64: 8, 8, 512>}, {pipeline_mode = #tpu.pipeline_mode<synchronous>, transform_indices = @transform_1, window_bounds = array<i64: 128, 512>}, {transform_indices = @transform_2, window_bounds = array<i64: 8, 8, 128>}]} {
    %c0_i32 = arith.constant 0 : i32
    %0 = arith.cmpi eq, %arg0, %c0_i32 : i32
    %c0_i32_0 = arith.constant 0 : i32
    %1 = arith.cmpi eq, %arg1, %c0_i32_0 : i32
    %2 = arith.andi %0, %1 : i1
    %3 = arith.extui %2 : i1 to i32
    %c0_i32_1 = arith.constant 0 : i32
    %4 = arith.cmpi ne, %3, %c0_i32_1 : i32
    scf.if %4 {
      %cst_18 = arith.constant 0.000000e+00 : f32
      %47 = vector.broadcast %cst_18 : f32 to vector<8x128xf32>
      %c0_19 = arith.constant 0 : index
      %c0_20 = arith.constant 0 : index
      %48 = vector.load %arg5[%c0_19, %c0_20] : memref<8x128xf32, #tpu.memory_space<vmem>>, vector<8x128xf32>
      tpu.vector_store %arg5[%c0_19, %c0_20], %47 {strides = array<i32>} : memref<8x128xf32, #tpu.memory_space<vmem>>, vector<8x128xf32>,
      %cst_21 = arith.constant 0.000000e+00 : f32
      %49 = vector.broadcast %cst_21 : f32 to vector<8x128xf32>
      %c0_22 = arith.constant 0 : index
      %c0_23 = arith.constant 0 : index
      %50 = vector.load %arg6[%c0_22, %c0_23] : memref<8x128xf32, #tpu.memory_space<vmem>>, vector<8x128xf32>
      tpu.vector_store %arg6[%c0_22, %c0_23], %49 {strides = array<i32>} : memref<8x128xf32, #tpu.memory_space<vmem>>, vector<8x128xf32>,
    } else {
    }
    %5 = arith.index_cast %arg1 : i32 to index
    %c0 = arith.constant 0 : index
    %c0_2 = arith.constant 0 : index
    %6 = vector.load %arg2[%5, %c0, %c0_2] : memref<8x8x512xbf16, #tpu.memory_space<vmem>>, vector<1x8x512xbf16>
    %7 = vector.shape_cast %6 : vector<1x8x512xbf16> to vector<8x512xbf16>
    %8 = arith.extf %7 : vector<8x512xbf16> to vector<8x512xf32>
    %c0_3 = arith.constant 0 : index
    %c0_4 = arith.constant 0 : index
    %9 = vector.load %arg5[%c0_3, %c0_4] : memref<8x128xf32, #tpu.memory_space<vmem>>, vector<8x128xf32>
    %10 = arith.truncf %9 : vector<8x128xf32> to vector<8x128xbf16>
    %c0_5 = arith.constant 0 : index
    %c0_6 = arith.constant 0 : index
    %11 = vector.load %arg3[%c0_5, %c0_6] : memref<128x512xbf16, #tpu.memory_space<vmem>>, vector<128x512xbf16>
    %cst = arith.constant dense<0.000000e+00> : vector<8x512xf32>
    %12 = tpu.matmul %10, %11, %cst {dimension_numbers = #tpu.dot_dimension_numbers<[1], [0], [0], [1], [0, 0, 1, 1], [], []>} : vector<8x128xbf16>, vector<128x512xbf16>, vector<8x512xf32> -> vector<8x512xf32>
    %13 = arith.addf %8, %12 : vector<8x512xf32>
    %14 = vector.extract_strided_slice %13 {offsets = [0, 0], sizes = [8, 128], strides = [1, 1]} : vector<8x512xf32> to vector<8x128xf32>
    %15 = arith.negf %14 : vector<8x128xf32>
    %16 = math.exp %15 : vector<8x128xf32>
    %cst_7 = arith.constant 1.000000e+00 : f32
    %17 = vector.broadcast %cst_7 : f32 to vector<8x128xf32>
    %18 = arith.addf %17, %16 : vector<8x128xf32>
    %19 = arith.divf %17, %18 : vector<8x128xf32>
    %20 = vector.extract_strided_slice %13 {offsets = [0, 128], sizes = [8, 128], strides = [1, 1]} : vector<8x512xf32> to vector<8x128xf32>
    %21 = arith.negf %20 : vector<8x128xf32>
    %22 = math.exp %21 : vector<8x128xf32>
    %cst_8 = arith.constant 1.000000e+00 : f32
    %23 = vector.broadcast %cst_8 : f32 to vector<8x128xf32>
    %24 = arith.addf %23, %22 : vector<8x128xf32>
    %25 = arith.divf %23, %24 : vector<8x128xf32>
    %26 = vector.extract_strided_slice %13 {offsets = [0, 256], sizes = [8, 128], strides = [1, 1]} : vector<8x512xf32> to vector<8x128xf32>
    %27 = math.tanh %26 : vector<8x128xf32>
    %28 = vector.extract_strided_slice %13 {offsets = [0, 384], sizes = [8, 128], strides = [1, 1]} : vector<8x512xf32> to vector<8x128xf32>
    %29 = arith.negf %28 : vector<8x128xf32>
    %30 = math.exp %29 : vector<8x128xf32>
    %cst_9 = arith.constant 1.000000e+00 : f32
    %31 = vector.broadcast %cst_9 : f32 to vector<8x128xf32>
    %32 = arith.addf %31, %30 : vector<8x128xf32>
    %33 = arith.divf %31, %32 : vector<8x128xf32>
    %c0_10 = arith.constant 0 : index
    %c0_11 = arith.constant 0 : index
    %34 = vector.load %arg6[%c0_10, %c0_11] : memref<8x128xf32, #tpu.memory_space<vmem>>, vector<8x128xf32>
    %35 = arith.mulf %25, %34 : vector<8x128xf32>
    %36 = arith.mulf %19, %27 : vector<8x128xf32>
    %37 = arith.addf %35, %36 : vector<8x128xf32>
    %38 = math.tanh %37 : vector<8x128xf32>
    %39 = arith.mulf %33, %38 : vector<8x128xf32>
    %c0_12 = arith.constant 0 : index
    %c0_13 = arith.constant 0 : index
    %40 = vector.load %arg6[%c0_12, %c0_13] : memref<8x128xf32, #tpu.memory_space<vmem>>, vector<8x128xf32>
    tpu.vector_store %arg6[%c0_12, %c0_13], %37 {strides = array<i32>} : memref<8x128xf32, #tpu.memory_space<vmem>>, vector<8x128xf32>,
    %c0_14 = arith.constant 0 : index
    %c0_15 = arith.constant 0 : index
    %41 = vector.load %arg5[%c0_14, %c0_15] : memref<8x128xf32, #tpu.memory_space<vmem>>, vector<8x128xf32>
    tpu.vector_store %arg5[%c0_14, %c0_15], %39 {strides = array<i32>} : memref<8x128xf32, #tpu.memory_space<vmem>>, vector<8x128xf32>,
    %42 = arith.truncf %39 : vector<8x128xf32> to vector<8x128xbf16>
    %43 = arith.index_cast %arg1 : i32 to index
    %c0_16 = arith.constant 0 : index
    %c0_17 = arith.constant 0 : index
    %44 = vector.load %arg4[%43, %c0_16, %c0_17] : memref<8x8x128xbf16, #tpu.memory_space<vmem>>, vector<1x8x128xbf16>
    %45 = vector.shape_cast %44 : vector<1x8x128xbf16> to vector<8x128xbf16>
    %46 = vector.shape_cast %42 : vector<8x128xbf16> to vector<1x8x128xbf16>
    tpu.vector_store %arg4[%43, %c0_16, %c0_17], %46 {strides = array<i32>} : memref<8x8x128xbf16, #tpu.memory_space<vmem>>, vector<1x8x128xbf16>,
    return
  }
  func.func @transform_0(%arg0: i32, %arg1: i32) -> (i32, i32, i32) {
    %c0_i32 = arith.constant 0 : i32
    %c0_i32_0 = arith.constant 0 : i32
    %c0_i32_1 = arith.constant 0 : i32
    return %arg0, %c0_i32, %c0_i32_0 : i32, i32, i32
  }
  func.func @transform_1(%arg0: i32, %arg1: i32) -> (i32, i32) {
    %c0_i32 = arith.constant 0 : i32
    %c0_i32_0 = arith.constant 0 : i32
    %c0_i32_1 = arith.constant 0 : i32
    return %c0_i32, %c0_i32_0 : i32, i32
  }
  func.func @transform_2(%arg0: i32, %arg1: i32) -> (i32, i32, i32) {
    %c0_i32 = arith.constant 0 : i32
    %c0_i32_0 = arith.constant 0 : i32
    %c0_i32_1 = arith.constant 0 : i32
    return %arg0, %c0_i32, %c0_i32_0 : i32, i32, i32
  }
}

module attributes {stable_mosaic.version = 11 : i64} {
  func.func @_matmul_bias_kernel(%arg0: i32, %arg1: i32, %arg2: i32, %arg3: memref<64x128xbf16, #tpu.memory_space<vmem>>, %arg4: memref<128x512xbf16, #tpu.memory_space<vmem>>, %arg5: memref<1x512xf32, #tpu.memory_space<vmem>>, %arg6: memref<64x512xbf16, #tpu.memory_space<vmem>>, %arg7: memref<64x512xf32, #tpu.memory_space<vmem>>) attributes {dimension_semantics = [#tpu.dimension_semantics<parallel>, #tpu.dimension_semantics<parallel>, #tpu.dimension_semantics<arbitrary>], iteration_bounds = array<i64: 1, 1, 1>, scalar_prefetch = 0 : i64, scratch_operands = 1 : i64, tpu.core_type = #tpu.core_type<tc>, window_params = [{transform_indices = @transform_0, window_bounds = array<i64: 64, 128>}, {transform_indices = @transform_1, window_bounds = array<i64: 128, 512>}, {transform_indices = @transform_2, window_bounds = array<i64: 1, 512>}, {transform_indices = @transform_3, window_bounds = array<i64: 64, 512>}]} {
    %c0_i32 = arith.constant 0 : i32
    %0 = arith.cmpi eq, %arg2, %c0_i32 : i32
    %1 = arith.extui %0 : i1 to i32
    %c0_i32_0 = arith.constant 0 : i32
    %2 = arith.cmpi ne, %1, %c0_i32_0 : i32
    scf.if %2 {
      %cst_10 = arith.constant 0.000000e+00 : f32
      %12 = vector.broadcast %cst_10 : f32 to vector<64x512xf32>
      %c0_11 = arith.constant 0 : index
      %c0_12 = arith.constant 0 : index
      %13 = vector.load %arg7[%c0_11, %c0_12] : memref<64x512xf32, #tpu.memory_space<vmem>>, vector<64x512xf32>
      tpu.vector_store %arg7[%c0_11, %c0_12], %12 {strides = array<i32>} : memref<64x512xf32, #tpu.memory_space<vmem>>, vector<64x512xf32>,
    } else {
    }
    %c0 = arith.constant 0 : index
    %c0_1 = arith.constant 0 : index
    %3 = vector.load %arg7[%c0, %c0_1] : memref<64x512xf32, #tpu.memory_space<vmem>>, vector<64x512xf32>
    %c0_2 = arith.constant 0 : index
    %c0_3 = arith.constant 0 : index
    %4 = vector.load %arg3[%c0_2, %c0_3] : memref<64x128xbf16, #tpu.memory_space<vmem>>, vector<64x128xbf16>
    %c0_4 = arith.constant 0 : index
    %c0_5 = arith.constant 0 : index
    %5 = vector.load %arg4[%c0_4, %c0_5] : memref<128x512xbf16, #tpu.memory_space<vmem>>, vector<128x512xbf16>
    %cst = arith.constant dense<0.000000e+00> : vector<64x512xf32>
    %6 = tpu.matmul %4, %5, %cst {dimension_numbers = #tpu.dot_dimension_numbers<[1], [0], [0], [1], [0, 0, 1, 1], [], []>} : vector<64x128xbf16>, vector<128x512xbf16>, vector<64x512xf32> -> vector<64x512xf32>
    %7 = arith.addf %3, %6 : vector<64x512xf32>
    %c0_6 = arith.constant 0 : index
    %c0_7 = arith.constant 0 : index
    %8 = vector.load %arg7[%c0_6, %c0_7] : memref<64x512xf32, #tpu.memory_space<vmem>>, vector<64x512xf32>
    tpu.vector_store %arg7[%c0_6, %c0_7], %7 {strides = array<i32>} : memref<64x512xf32, #tpu.memory_space<vmem>>, vector<64x512xf32>,
    %c0_i32_8 = arith.constant 0 : i32
    %9 = arith.cmpi eq, %arg2, %c0_i32_8 : i32
    %10 = arith.extui %9 : i1 to i32
    %c0_i32_9 = arith.constant 0 : i32
    %11 = arith.cmpi ne, %10, %c0_i32_9 : i32
    scf.if %11 {
      %c0_10 = arith.constant 0 : index
      %c0_11 = arith.constant 0 : index
      %12 = vector.load %arg7[%c0_10, %c0_11] : memref<64x512xf32, #tpu.memory_space<vmem>>, vector<64x512xf32>
      %c0_12 = arith.constant 0 : index
      %c0_13 = arith.constant 0 : index
      %13 = vector.load %arg5[%c0_12, %c0_13] : memref<1x512xf32, #tpu.memory_space<vmem>>, vector<1x512xf32>
      %14 = vector.broadcast %13 : vector<1x512xf32> to vector<64x512xf32>
      %15 = arith.addf %12, %14 : vector<64x512xf32>
      %16 = arith.truncf %15 : vector<64x512xf32> to vector<64x512xbf16>
      %c0_14 = arith.constant 0 : index
      %c0_15 = arith.constant 0 : index
      %17 = vector.load %arg6[%c0_14, %c0_15] : memref<64x512xbf16, #tpu.memory_space<vmem>>, vector<64x512xbf16>
      tpu.vector_store %arg6[%c0_14, %c0_15], %16 {strides = array<i32>} : memref<64x512xbf16, #tpu.memory_space<vmem>>, vector<64x512xbf16>,
    } else {
    }
    return
  }
  func.func @transform_0(%arg0: i32, %arg1: i32, %arg2: i32) -> (i32, i32) {
    %c0_i32 = arith.constant 0 : i32
    return %arg0, %arg2 : i32, i32
  }
  func.func @transform_1(%arg0: i32, %arg1: i32, %arg2: i32) -> (i32, i32) {
    %c0_i32 = arith.constant 0 : i32
    return %arg2, %arg1 : i32, i32
  }
  func.func @transform_2(%arg0: i32, %arg1: i32, %arg2: i32) -> (i32, i32) {
    %c0_i32 = arith.constant 0 : i32
    %c0_i32_0 = arith.constant 0 : i32
    return %c0_i32, %arg1 : i32, i32
  }
  func.func @transform_3(%arg0: i32, %arg1: i32, %arg2: i32) -> (i32, i32) {
    %c0_i32 = arith.constant 0 : i32
    return %arg0, %arg1 : i32, i32
  }
}

module attributes {stable_mosaic.version = 11 : i64} {
  func.func @_matmul_bias_kernel(%arg0: i32, %arg1: i32, %arg2: i32, %arg3: memref<64x128xbf16, #tpu.memory_space<vmem>>, %arg4: memref<128x128xbf16, #tpu.memory_space<vmem>>, %arg5: memref<1x128xf32, #tpu.memory_space<vmem>>, %arg6: memref<64x128xf32, #tpu.memory_space<vmem>>, %arg7: memref<64x128xf32, #tpu.memory_space<vmem>>) attributes {dimension_semantics = [#tpu.dimension_semantics<parallel>, #tpu.dimension_semantics<parallel>, #tpu.dimension_semantics<arbitrary>], iteration_bounds = array<i64: 1, 1, 1>, scalar_prefetch = 0 : i64, scratch_operands = 1 : i64, tpu.core_type = #tpu.core_type<tc>, window_params = [{transform_indices = @transform_0, window_bounds = array<i64: 64, 128>}, {transform_indices = @transform_1, window_bounds = array<i64: 128, 128>}, {transform_indices = @transform_2, window_bounds = array<i64: 1, 128>}, {transform_indices = @transform_3, window_bounds = array<i64: 64, 128>}]} {
    %c0_i32 = arith.constant 0 : i32
    %0 = arith.cmpi eq, %arg2, %c0_i32 : i32
    %1 = arith.extui %0 : i1 to i32
    %c0_i32_0 = arith.constant 0 : i32
    %2 = arith.cmpi ne, %1, %c0_i32_0 : i32
    scf.if %2 {
      %cst_10 = arith.constant 0.000000e+00 : f32
      %12 = vector.broadcast %cst_10 : f32 to vector<64x128xf32>
      %c0_11 = arith.constant 0 : index
      %c0_12 = arith.constant 0 : index
      %13 = vector.load %arg7[%c0_11, %c0_12] : memref<64x128xf32, #tpu.memory_space<vmem>>, vector<64x128xf32>
      tpu.vector_store %arg7[%c0_11, %c0_12], %12 {strides = array<i32>} : memref<64x128xf32, #tpu.memory_space<vmem>>, vector<64x128xf32>,
    } else {
    }
    %c0 = arith.constant 0 : index
    %c0_1 = arith.constant 0 : index
    %3 = vector.load %arg7[%c0, %c0_1] : memref<64x128xf32, #tpu.memory_space<vmem>>, vector<64x128xf32>
    %c0_2 = arith.constant 0 : index
    %c0_3 = arith.constant 0 : index
    %4 = vector.load %arg3[%c0_2, %c0_3] : memref<64x128xbf16, #tpu.memory_space<vmem>>, vector<64x128xbf16>
    %c0_4 = arith.constant 0 : index
    %c0_5 = arith.constant 0 : index
    %5 = vector.load %arg4[%c0_4, %c0_5] : memref<128x128xbf16, #tpu.memory_space<vmem>>, vector<128x128xbf16>
    %cst = arith.constant dense<0.000000e+00> : vector<64x128xf32>
    %6 = tpu.matmul %4, %5, %cst {dimension_numbers = #tpu.dot_dimension_numbers<[1], [0], [0], [1], [0, 0, 1, 1], [], []>} : vector<64x128xbf16>, vector<128x128xbf16>, vector<64x128xf32> -> vector<64x128xf32>
    %7 = arith.addf %3, %6 : vector<64x128xf32>
    %c0_6 = arith.constant 0 : index
    %c0_7 = arith.constant 0 : index
    %8 = vector.load %arg7[%c0_6, %c0_7] : memref<64x128xf32, #tpu.memory_space<vmem>>, vector<64x128xf32>
    tpu.vector_store %arg7[%c0_6, %c0_7], %7 {strides = array<i32>} : memref<64x128xf32, #tpu.memory_space<vmem>>, vector<64x128xf32>,
    %c0_i32_8 = arith.constant 0 : i32
    %9 = arith.cmpi eq, %arg2, %c0_i32_8 : i32
    %10 = arith.extui %9 : i1 to i32
    %c0_i32_9 = arith.constant 0 : i32
    %11 = arith.cmpi ne, %10, %c0_i32_9 : i32
    scf.if %11 {
      %c0_10 = arith.constant 0 : index
      %c0_11 = arith.constant 0 : index
      %12 = vector.load %arg7[%c0_10, %c0_11] : memref<64x128xf32, #tpu.memory_space<vmem>>, vector<64x128xf32>
      %c0_12 = arith.constant 0 : index
      %c0_13 = arith.constant 0 : index
      %13 = vector.load %arg5[%c0_12, %c0_13] : memref<1x128xf32, #tpu.memory_space<vmem>>, vector<1x128xf32>
      %14 = vector.broadcast %13 : vector<1x128xf32> to vector<64x128xf32>
      %15 = arith.addf %12, %14 : vector<64x128xf32>
      %c0_14 = arith.constant 0 : index
      %c0_15 = arith.constant 0 : index
      %16 = vector.load %arg6[%c0_14, %c0_15] : memref<64x128xf32, #tpu.memory_space<vmem>>, vector<64x128xf32>
      tpu.vector_store %arg6[%c0_14, %c0_15], %15 {strides = array<i32>} : memref<64x128xf32, #tpu.memory_space<vmem>>, vector<64x128xf32>,
    } else {
    }
    return
  }
  func.func @transform_0(%arg0: i32, %arg1: i32, %arg2: i32) -> (i32, i32) {
    %c0_i32 = arith.constant 0 : i32
    return %arg0, %arg2 : i32, i32
  }
  func.func @transform_1(%arg0: i32, %arg1: i32, %arg2: i32) -> (i32, i32) {
    %c0_i32 = arith.constant 0 : i32
    return %arg2, %arg1 : i32, i32
  }
  func.func @transform_2(%arg0: i32, %arg1: i32, %arg2: i32) -> (i32, i32) {
    %c0_i32 = arith.constant 0 : i32
    %c0_i32_0 = arith.constant 0 : i32
    return %c0_i32, %arg1 : i32, i32
  }
  func.func @transform_3(%arg0: i32, %arg1: i32, %arg2: i32) -> (i32, i32) {
    %c0_i32 = arith.constant 0 : i32
    return %arg0, %arg1 : i32, i32
  }
}

</mosaic_0001>

<bundles_post_ra>
// kernel: lstm_forward.4
= control target key start
LH: loop header
LB: loop body
LE: loop exit
PB: predicated region body
PF: predicated region fallthrough
CT: control target
= control target key end

     0   :  { %s740_s9 = smov 0   ;;  %s742_s10 = smov 0   ;;  %s874_s0 = inlined_call_operand.vmem [shape: bf16[8,8,512], index: 0, kind: input, shape index: {}]   ;;  %s875_s1 = inlined_call_operand.vmem [shape: bf16[128,512], index: 1, kind: input, shape index: {}]   ;;  %s876_s2 = inlined_call_operand.vmem [shape: bf16[8,8,128], index: 2, kind: output, shape index: {}]  }
   0x1   :  { %s744_s11 = smov 0  }
   0x2 LB: > { %s21_s12 = sadd.s32 1, %s717_s10  ;;  %p563_p0 = scmp.ge.s32.totalorder %s721_s11, 1  ;;  %s721_s11 = sphi %s744_s11, %s12_s11   ;;  %s717_s10 = sphi %s742_s10, %s878_s10   ;;  %s713_s9 = sphi %s740_s9, %s877_s9  }
   0x3   : > { %p22_p1 = scmp.ge.s32.totalorder %s21_s12, 8  ;;  %p126_p2 = scmp.lt.s32.totalorder %s721_s11, 9 }
   0x5   : > { %s880_s12 = smov (%p22_p1, %s21_s12), 0  ;;  %p127_p3 = pnand %p563_p0, %p126_p2 }
   0x6   : > { %p164_p4 = scmp.eq.s32.totalorder (!%p127_p3), %s713_s9, 0 }
   0x7   : > { %130 = sbr.rel (%p127_p3) target bundleno = 316 (0x13c), region = 28 }
   0xe   : > { %168 = sbr.rel (!%p164_p4) target bundleno = 21 (0x15), region = 32  ;;  %v723_v0 = vmov (%p164_p4), 0.0  }
   0xf   : > { %169 = vst [vmem:[#allocation2] sm:$0xff] (%p164_p4), %v723_v0  ;;  %170 = vst [vmem:[#allocation3] sm:$0xff] (%p164_p4), %v723_v0 }
  0x15 PF: > { %v635_v1 = vld [vmem:[%s875_s1 + $0x4] ss:$16 sps:$4 sm:$0xff]   ;;  %v637_v2 = vld [vmem:[%s875_s1] ss:$16 sps:$4 sm:$0xff]   ;;  %v724_v3 = vmov 0   ;;  %s608_s29 = sshll.u32 %s713_s9, 4 }
  0x16   : > { %406 = vmatprep.mubr.bf16.mxu0 %v724_v3  ;;  %447 = vmatprep.mubr.bf16.mxu1 %v724_v3  ;;  %v638_v4 = vld [vmem:[%s875_s1 + $0x24] ss:$16 sps:$4 sm:$0xff]   ;;  %v640_v5 = vld [vmem:[%s875_s1 + $0x20] ss:$16 sps:$4 sm:$0xff]   ;;  %v646_v7 = vld [vmem:[%s875_s1 + $0xc] ss:$16 sps:$4 sm:$0xff]   ;;  %s173_s4 = scalar_lea.vmem %s874_s0, %s608_s29 }
  0x17   : > { %374 = vmatprep.subr.bf16.mxu0 %v635_v1  ;;  %v641_v6 = vld [vmem:[%s875_s1 + $0x44] ss:$16 sps:$4 sm:$0xff]   ;;  %v649_v8 = vld [vmem:[%s875_s1 + $0x8] ss:$16 sps:$4 sm:$0xff]   ;;  %v643_v9 = vld [vmem:[%s875_s1 + $0x40] ss:$16 sps:$4 sm:$0xff]   ;;  %415 = vmatprep.subr.bf16.mxu1 %v646_v7 }
  0x18   : > { %375 = vmatpush1.bf16.msra.mxu0 %v637_v2  ;;  %v644_v10 = vld [vmem:[%s875_s1 + $0x64] ss:$16 sps:$4 sm:$0xff]   ;;  %416 = vmatpush1.bf16.msra.mxu1 %v649_v8  ;;  %v652_v11 = vld [vmem:[%s875_s1 + $0x2c] ss:$16 sps:$4 sm:$0xff]   ;;  %v655_v12 = vld [vmem:[%s875_s1 + $0x28] ss:$16 sps:$4 sm:$0xff]  }
  0x19   : > { %376 = vmatprep.subr.bf16.mxu0 %v638_v4  ;;  %417 = vmatprep.subr.bf16.mxu1 %v652_v11  ;;  %v648_v13 = vld [vmem:[%s875_s1 + $0x60] ss:$16 sps:$4 sm:$0xff]   ;;  %v650_v14 = vld [vmem:[%s875_s1 + $0x84] ss:$16 sps:$4 sm:$0xff]   ;;  %v658_v15 = vld [vmem:[%s875_s1 + $0x4c] ss:$16 sps:$4 sm:$0xff]  }
  0x1a   : > { %v661_v16 = vld [vmem:[%s875_s1 + $0x48] ss:$16 sps:$4 sm:$0xff]   ;;  %v664_v17 = vld [vmem:[%s875_s1 + $0x6c] ss:$16 sps:$4 sm:$0xff]   ;;  %v654_v18 = vld [vmem:[%s875_s1 + $0x80] ss:$16 sps:$4 sm:$0xff]  }
  0x1b   : > { %v656_v19 = vld [vmem:[%s875_s1 + $0xa4] ss:$16 sps:$4 sm:$0xff]   ;;  %v667_v20 = vld [vmem:[%s875_s1 + $0x68] ss:$16 sps:$4 sm:$0xff]   ;;  %v670_v21 = vld [vmem:[%s875_s1 + $0x8c] ss:$16 sps:$4 sm:$0xff]  }
  0x1c   : > { %377 = vmatpush1.bf16.msra.mxu0 %v640_v5  ;;  %418 = vmatpush1.bf16.msra.mxu1 %v655_v12  ;;  %v660_v22 = vld [vmem:[%s875_s1 + $0xa0] ss:$16 sps:$4 sm:$0xff]   ;;  %v662_v23 = vld [vmem:[%s875_s1 + $0xc4] ss:$16 sps:$4 sm:$0xff]   ;;  %v673_v24 = vld [vmem:[%s875_s1 + $0x88] ss:$16 sps:$4 sm:$0xff]  }
  0x1d   : > { %378 = vmatprep.subr.bf16.mxu0 %v641_v6  ;;  %419 = vmatprep.subr.bf16.mxu1 %v658_v15  ;;  %v674_v25 = vld [vmem:[%s875_s1 + $0xac] ss:$16 sps:$4 sm:$0xff]   ;;  %v666_v26 = vld [vmem:[%s875_s1 + $0xc0] ss:$16 sps:$4 sm:$0xff]   ;;  %v668_v27 = vld [vmem:[%s875_s1 + $0xe4] ss:$16 sps:$4 sm:$0xff]  }
  0x1e   : > { %v676_v28 = vld [vmem:[%s875_s1 + $0xa8] ss:$16 sps:$4 sm:$0xff]   ;;  %v677_v29 = vld [vmem:[%s875_s1 + $0xcc] ss:$16 sps:$4 sm:$0xff]   ;;  %v672_v30 = vld [vmem:[%s875_s1 + $0xe0] ss:$16 sps:$4 sm:$0xff]  }
  0x1f   : > { %v180_v31 = vld [vmem:[#allocation2] sm:$0xff]  ;;  %v679_v32 = vld [vmem:[%s875_s1 + $0xc8] ss:$16 sps:$4 sm:$0xff]   ;;  %v680_v33 = vld [vmem:[%s875_s1 + $0xec] ss:$16 sps:$4 sm:$0xff]   ;;  %s602_s5 = sshll.u32 %s713_s9, 2 }
  0x20   : > { %379 = vmatpush1.bf16.msra.mxu0 %v643_v9  ;;  %420 = vmatpush1.bf16.msra.mxu1 %v661_v16  ;;  %v181_v34 = vpack.c.bf16 %v180_v31, %v180_v31  ;;  %v682_v35 = vld [vmem:[%s875_s1 + $0xe8] ss:$16 sps:$4 sm:$0xff]   ;;  %v174_v36 = vld [vmem:[%s173_s4] sm:$0xff]  ;;  %s489_s8 = scalar_lea.vmem %s876_s2, %s602_s5 }
  0x21   : > { %380 = vmatprep.subr.bf16.mxu0 %v644_v10  ;;  %421 = vmatprep.subr.bf16.mxu1 %v664_v17  ;;  %v176_v37 = vunpack.c.l.bf16 %v174_v36  ;;  %v177_v38 = vunpack.c.h.bf16 %v174_v36  ;;  %v175_v40 = vld [vmem:[%s173_s4 + $0x8] sm:$0xff] }
  0x22   : > { %v179_v47 = vunpack.c.h.bf16 %v175_v40  ;;  %v178_v53 = vunpack.c.l.bf16 %v175_v40  ;;  %v479_v63 = vld [vmem:[#allocation3] sm:$0xff] }
  0x24   : > { %381 = vmatpush1.bf16.msra.mxu0 %v648_v13  ;;  %422 = vmatpush1.bf16.msra.mxu1 %v667_v20 }
  0x25   : > { %382 = vmatprep.subr.bf16.mxu0 %v650_v14  ;;  %423 = vmatprep.subr.bf16.mxu1 %v670_v21 }
  0x28   : > { %383 = vmatpush1.bf16.msra.mxu0 %v654_v18  ;;  %424 = vmatpush1.bf16.msra.mxu1 %v673_v24 }
  0x29   : > { %384 = vmatprep.subr.bf16.mxu0 %v656_v19  ;;  %425 = vmatprep.subr.bf16.mxu1 %v674_v25 }
  0x2c   : > { %385 = vmatpush1.bf16.msra.mxu0 %v660_v22  ;;  %426 = vmatpush1.bf16.msra.mxu1 %v676_v28 }
  0x2d   : > { %386 = vmatprep.subr.bf16.mxu0 %v662_v23  ;;  %427 = vmatprep.subr.bf16.mxu1 %v677_v29 }
  0x30   : > { %387 = vmatpush1.bf16.msra.mxu0 %v666_v26  ;;  %428 = vmatpush1.bf16.msra.mxu1 %v679_v32 }
  0x31   : > { %388 = vmatprep.subr.bf16.mxu0 %v668_v27  ;;  %429 = vmatprep.subr.bf16.mxu1 %v680_v33 }
  0x34   : > { %389 = vmatpush1.bf16.msra.mxu0 %v672_v30  ;;  %430 = vmatpush1.bf16.msra.mxu1 %v682_v35 }
  0x37   : > { %407 = vmatmul.mubr.bf16.vlgmr.msra.gmra.mrb[0].mxu0 %v181_v34  ;;  %448 = vmatmul.mubr.bf16.vlgmr.msra.gmra.mrb[0].mxu1 %v181_v34 }
 0x10a   : > { %v408_v39 = vpop.f32.mrb[0].mxu0  ;;  %v449_v49 = vpop.f32.mrb[0].mxu1 }
 0x10b   : > { %v456_v41 = vadd.f32 %v408_v39, %v176_v37  ;;  %v410_v42 = vpop.f32.mrb[1].mxu0  ;;  %v451_v50 = vpop.f32.mrb[1].mxu1  ;;  %v458_v56 = vadd.f32 %v449_v49, %v178_v53 }
 0x10c   : > { %v457_v43 = vadd.f32 %v410_v42, %v177_v38  ;;  %v412_v44 = vpop.f32.mrb[2].mxu0  ;;  %v459_v51 = vadd.f32 %v451_v50, %v179_v47  ;;  %v453_v52 = vpop.f32.mrb[2].mxu1 }
 0x10d   : > { %v599_v45 = vmul.f32 -1.442695, %v456_v41  ;;  %v413_v46 = vpop.f32.mrb[3].mxu0  ;;  %v454_v54 = vpop.f32.mrb[3].mxu1 }
 0x10e   : > { %v600_v48 = vmul.f32 -1.442695, %v457_v43  ;;  %v601_v55 = vmul.f32 -1.442695, %v459_v51 }
 0x10f   : > { %683 = vpow2.f32 %v599_v45 }
 0x110   : > { %685 = vpow2.f32 %v600_v48 }
 0x111   : > { %687 = vpow2.f32 %v601_v55 }
 0x112   : > { %689 = vtanh.f32 %v458_v56 }
 0x119   : > { %v684_v57 = vpop.eup %683 }
 0x11a   : > { %v686_v58 = vpop.eup %685  ;;  %v463_v59 = vadd.f32 1.0, %v684_v57 }
 0x11b   : > { %v469_v60 = vadd.f32 1.0, %v686_v58  ;;  %v688_v61 = vpop.eup %687 }
 0x11c   : > { %691 = vrcp.f32 %v463_v59  ;;  %v690_v62 = vpop.eup %689  ;;  %v476_v1 = vadd.f32 1.0, %v688_v61 }
 0x11d   : > { %693 = vrcp.f32 %v469_v60 }
 0x11e   : > { %695 = vrcp.f32 %v476_v1 }
 0x126   : > { %v692_v0 = vpop.eup %691 }
 0x127   : > { %v694_v2 = vpop.eup %693  ;;  %v481_v3 = vmul.f32 %v692_v0, %v690_v62 }
 0x128   : > { %v480_v4 = vmul.f32 %v694_v2, %v479_v63  ;;  %v696_v6 = vpop.eup %695 }
 0x12a   : > { %v482_v5 = vadd.f32 %v481_v3, %v480_v4 }
 0x12c   : > { %697 = vtanh.f32 %v482_v5  ;;  %485 = vst [vmem:[#allocation3] sm:$0xff] %v482_v5 }
 0x136   : > { %v698_v7 = vpop.eup %697 }
 0x137   : > { %v484_v8 = vmul.f32 %v698_v7, %v696_v6 }
 0x139   : > { %486 = vst [vmem:[#allocation2] sm:$0xff] %v484_v8  ;;  %v487_v9 = vpack.c.bf16 %v484_v8, %v484_v8 }
 0x13b   : > { %490 = vst [vmem:[%s489_s8] sm:$0xf] %v487_v9 }
 0x13c PF: > { %s12_s11 = sadd.s32 1, %s721_s11   ;;  %s877_s9 = smov %s717_s10 }
 0x13d   : > { %p9_p5 = scmp.ge.s32.totalorder %s12_s11, 10   ;;  %s878_s10 = smov %s880_s12 }
 0x13f   :  { %11 = sbr.rel (!%p9_p5) target bundleno = 2 (0x2), region = 64 }

// kernel: lstm_forward.5
= control target key start
LH: loop header
LB: loop body
LE: loop exit
PB: predicated region body
PF: predicated region fallthrough
CT: control target
= control target key end

     0   :  { %s410_s1 = inlined_call_operand.vmem [shape: bf16[128,128], index: 1, kind: input, shape index: {}]   ;;  %s411_s0 = inlined_call_operand.vmem [shape: bf16[64,128], index: 0, kind: input, shape index: {}]   ;;  %s412_s2 = inlined_call_operand.vmem [shape: f32[1,128], index: 2, kind: input, shape index: {}]   ;;  %s413_s3 = inlined_call_operand.vmem [shape: f32[64,128], index: 3, kind: output, shape index: {}]  }
   0x1   :  { %v315_v0 = vld [vmem:[%s410_s1] sm:$0xff]   ;;  %v316_v1 = vld [vmem:[%s410_s1 + $0x8] sm:$0xff]   ;;  %v317_v2 = vld [vmem:[%s410_s1 + $0x10] sm:$0xff]  }
   0x2   :  { %275 = vmatprep.subr.bf16.mxu0 %v315_v0  ;;  %299 = vmatprep.subr.bf16.mxu1 %v315_v0  ;;  %v318_v3 = vld [vmem:[%s410_s1 + $0x18] sm:$0xff]   ;;  %v323_v4 = vld [vmem:[%s411_s0] sm:$0xff]   ;;  %v324_v5 = vld [vmem:[%s411_s0 + $0x10] sm:$0xff]  }
   0x3   :  { %276 = vmatpush3.bf16.msra.mxu0 %v315_v0  ;;  %307 = vmatpush3.bf16.msra.mxu1 %v315_v0  ;;  %v319_v6 = vld [vmem:[%s410_s1 + $0x20] sm:$0xff]   ;;  %v320_v7 = vld [vmem:[%s410_s1 + $0x28] sm:$0xff]   ;;  %v321_v8 = vld [vmem:[%s410_s1 + $0x30] sm:$0xff]  }
   0x4   :  { %277 = vmatprep.subr.bf16.mxu0 %v316_v1  ;;  %300 = vmatprep.subr.bf16.mxu1 %v316_v1  ;;  %v322_v9 = vld [vmem:[%s410_s1 + $0x38] sm:$0xff]   ;;  %v325_v10 = vld [vmem:[%s411_s0 + $0x8] sm:$0xff]   ;;  %v262_v12 = vld [vmem:[%s412_s2] ss:$0 sm:$0xff] }
   0x5   :  { %291 = vmatprep.mubr.bf16.mxu0 %v323_v4  ;;  %295 = vmatprep.mubr.bf16.mxu1 %v324_v5  ;;  %v326_v11 = vld [vmem:[%s411_s0 + $0x18] sm:$0xff]  }
   0x7   :  { %278 = vmatpush3.bf16.msra.mxu0 %v316_v1  ;;  %308 = vmatpush3.bf16.msra.mxu1 %v316_v1 }
   0x8   :  { %279 = vmatprep.subr.bf16.mxu0 %v317_v2  ;;  %301 = vmatprep.subr.bf16.mxu1 %v317_v2 }
   0xb   :  { %280 = vmatpush3.bf16.msra.mxu0 %v317_v2  ;;  %309 = vmatpush3.bf16.msra.mxu1 %v317_v2 }
   0xc   :  { %281 = vmatprep.subr.bf16.mxu0 %v318_v3  ;;  %302 = vmatprep.subr.bf16.mxu1 %v318_v3 }
   0xf   :  { %282 = vmatpush3.bf16.msra.mxu0 %v318_v3  ;;  %310 = vmatpush3.bf16.msra.mxu1 %v318_v3 }
  0x10   :  { %283 = vmatprep.subr.bf16.mxu0 %v319_v6  ;;  %303 = vmatprep.subr.bf16.mxu1 %v319_v6 }
  0x13   :  { %284 = vmatpush3.bf16.msra.mxu0 %v319_v6  ;;  %311 = vmatpush3.bf16.msra.mxu1 %v319_v6 }
  0x14   :  { %285 = vmatprep.subr.bf16.mxu0 %v320_v7  ;;  %304 = vmatprep.subr.bf16.mxu1 %v320_v7 }
  0x17   :  { %286 = vmatpush3.bf16.msra.mxu0 %v320_v7  ;;  %312 = vmatpush3.bf16.msra.mxu1 %v320_v7 }
  0x18   :  { %287 = vmatprep.subr.bf16.mxu0 %v321_v8  ;;  %305 = vmatprep.subr.bf16.mxu1 %v321_v8 }
  0x1b   :  { %288 = vmatpush3.bf16.msra.mxu0 %v321_v8  ;;  %313 = vmatpush3.bf16.msra.mxu1 %v321_v8 }
  0x1c   :  { %289 = vmatprep.subr.bf16.mxu0 %v322_v9  ;;  %306 = vmatprep.subr.bf16.mxu1 %v322_v9 }
  0x1f   :  { %290 = vmatpush3.bf16.msra.mxu0 %v322_v9  ;;  %314 = vmatpush3.bf16.msra.mxu1 %v322_v9 }
  0x22   :  { %292 = vmatmul.mubr.bf16.vlgmr.msra.gmra.mrb[0].mxu0 %v325_v10  ;;  %296 = vmatmul.mubr.bf16.vlgmr.msra.gmra.mrb[0].mxu1 %v326_v11 }
  0xf5   :  { %v293_v13 = vpop.f32.mrb[0].mxu0  ;;  %v297_v14 = vpop.f32.mrb[0].mxu1 }
  0xf6   :  { %v232_v15 = vadd.f32 %v293_v13, %v262_v12  ;;  %v236_v16 = vadd.f32 %v297_v14, %v262_v12  ;;  %v165_v17 = vpop.f32.mrb[1].mxu0  ;;  %v181_v18 = vpop.f32.mrb[1].mxu1 }
  0xf7   :  { %v230_v19 = vadd.f32 %v262_v12, %v165_v17  ;;  %v234_v20 = vadd.f32 %v262_v12, %v181_v18  ;;  %v294_v21 = vpop.f32.mrb[2].mxu0  ;;  %v298_v22 = vpop.f32.mrb[2].mxu1 }
  0xf8   :  { %240 = vst [vmem:[%s413_s3 + $0x10] sm:$0xff] %v232_v15  ;;  %244 = vst [vmem:[%s413_s3 + $0x30] sm:$0xff] %v236_v16  ;;  %v233_v23 = vadd.f32 %v294_v21, %v262_v12  ;;  %v237_v24 = vadd.f32 %v298_v22, %v262_v12  ;;  %v168_v25 = vpop.f32.mrb[3].mxu0  ;;  %v184_v26 = vpop.f32.mrb[3].mxu1 }
  0xf9   :  { %238 = vst [vmem:[%s413_s3] sm:$0xff] %v230_v19  ;;  %242 = vst [vmem:[%s413_s3 + $0x20] sm:$0xff] %v234_v20  ;;  %v231_v27 = vadd.f32 %v262_v12, %v168_v25  ;;  %v235_v28 = vadd.f32 %v262_v12, %v184_v26 }
  0xfa   :  { %241 = vst [vmem:[%s413_s3 + $0x18] sm:$0xff] %v233_v23  ;;  %245 = vst [vmem:[%s413_s3 + $0x38] sm:$0xff] %v237_v24 }
  0xfb   :  { %239 = vst [vmem:[%s413_s3 + $0x8] sm:$0xff] %v231_v27  ;;  %243 = vst [vmem:[%s413_s3 + $0x28] sm:$0xff] %v235_v28 }

// kernel: lstm_forward.3
= control target key start
LH: loop header
LB: loop body
LE: loop exit
PB: predicated region body
PF: predicated region fallthrough
CT: control target
= control target key end

     0   :  { %8 = vsyncpa [#allocation4], 0  ;;  %s885_s12 = smov [#allocation3]   ;;  %s1032_s0 = inlined_call_operand.vmem [shape: bf16[64,128], index: 0, kind: input, shape index: {}]   ;;  %s1033_s1 = inlined_call_operand.hbm [shape: bf16[128,512], index: 1, kind: input, shape index: {}]   ;;  %s1034_s2 = inlined_call_operand.vmem [shape: f32[1,512], index: 2, kind: input, shape index: {}]   ;;  %s1035_s3 = inlined_call_operand.vmem [shape: bf16[64,512], index: 3, kind: output, shape index: {}]  }
   0x1   :  { %s16_s13 = sshll.u32 %s885_s12, 4  ;;  %s861_s16 = scalar_lea.hbm %s1033_s1, 4096  ;;  %s17_s13 = int_to_ptr.vmem [resolvable:$true] %s16_s13 }
   0x2   :  { %p862_p0 = scmp.ne.s32.totalorder %s1033_s1, %s861_s16  ;;  %p865_p1 = scmp.lt.u32.totalorder %s861_s16, %s1033_s1 }
   0x4   :  { %p867_p2 = pnand %p865_p1, %p862_p0 }
   0x6   :  { %870 = shalt.err (!%p867_p2)
}
   0x7   :  { %s871_s21 = scalar_lea.vmem %s17_s13, 4096  ;;  %p876_p4 = scmp.lt.s32.totalorder %s17_s13, %s17_s13 }
   0x8   :  { %p872_p3 = scmp.ne.s32.totalorder %s17_s13, %s871_s21  ;;  %p877_p5 = scmp.lt.s32.totalorder %s871_s21, %s871_s21 }
   0xa   :  { %p878_p6 = por %p877_p5, %p876_p4 }
   0xc   :  { %p879_p7 = pnand %p878_p6, %p872_p3 }
   0xe   :  { %882 = shalt.err (!%p879_p7)
}
   0xf   :  { %s886_s22 = smov 256   ;;  %s887_s23 = smov 16  }
  0x10   :  { %22 = dma.hbm_to_vmem [thread:$0]  %s1033_s1, 4096, %s17_s13, [#allocation4], %s886_s22, %s886_s22, %s887_s23  }
  0x11   :  { %883 = dma.done.wait [#allocation4], 4096  }
  0x12   :  { %884 = vsyncadd [#allocation4], 4294963200  ;;  %v888_v0 = vmov 0   ;;  %v809_v1 = vld [vmem:[#allocation3 + $0x4] ss:$16 sps:$4 sm:$0xff]   ;;  %v858_v34 = vld [vmem:[%s1032_s0 + $0x8] sm:$0xff]   ;;  %v568_v37 = vlaneseq }
  0x13   :  { %353 = vmatprep.mubr.bf16.mxu0 %v888_v0  ;;  %426 = vmatprep.mubr.bf16.mxu1 %v888_v0  ;;  %v811_v2 = vld [vmem:[#allocation3 + $0xc] ss:$16 sps:$4 sm:$0xff]   ;;  %v813_v3 = vld [vmem:[#allocation3] ss:$16 sps:$4 sm:$0xff]   ;;  %v814_v4 = vld [vmem:[#allocation3 + $0x8] ss:$16 sps:$4 sm:$0xff]  }
  0x14   :  { %321 = vmatprep.subr.bf16.mxu0 %v809_v1  ;;  %394 = vmatprep.subr.bf16.mxu1 %v811_v2  ;;  %v815_v5 = vld [vmem:[#allocation3 + $0x24] ss:$16 sps:$4 sm:$0xff]   ;;  %v817_v6 = vld [vmem:[#allocation3 + $0x2c] ss:$16 sps:$4 sm:$0xff]   ;;  %v819_v7 = vld [vmem:[#allocation3 + $0x20] ss:$16 sps:$4 sm:$0xff]  }
  0x15   :  { %322 = vmatpush1.bf16.msra.mxu0 %v813_v3  ;;  %395 = vmatpush1.bf16.msra.mxu1 %v814_v4  ;;  %v820_v8 = vld [vmem:[#allocation3 + $0x28] ss:$16 sps:$4 sm:$0xff]   ;;  %v821_v9 = vld [vmem:[#allocation3 + $0x44] ss:$16 sps:$4 sm:$0xff]   ;;  %v823_v10 = vld [vmem:[#allocation3 + $0x4c] ss:$16 sps:$4 sm:$0xff]  }
  0x16   :  { %323 = vmatprep.subr.bf16.mxu0 %v815_v5  ;;  %396 = vmatprep.subr.bf16.mxu1 %v817_v6  ;;  %v825_v11 = vld [vmem:[#allocation3 + $0x40] ss:$16 sps:$4 sm:$0xff]   ;;  %v826_v12 = vld [vmem:[#allocation3 + $0x48] ss:$16 sps:$4 sm:$0xff]   ;;  %v827_v13 = vld [vmem:[#allocation3 + $0x64] ss:$16 sps:$4 sm:$0xff]  }
  0x17   :  { %v829_v14 = vld [vmem:[#allocation3 + $0x6c] ss:$16 sps:$4 sm:$0xff]   ;;  %v831_v15 = vld [vmem:[#allocation3 + $0x60] ss:$16 sps:$4 sm:$0xff]   ;;  %v832_v16 = vld [vmem:[#allocation3 + $0x68] ss:$16 sps:$4 sm:$0xff]  }
  0x18   :  { %v833_v17 = vld [vmem:[#allocation3 + $0x84] ss:$16 sps:$4 sm:$0xff]   ;;  %v835_v18 = vld [vmem:[#allocation3 + $0x8c] ss:$16 sps:$4 sm:$0xff]   ;;  %v837_v19 = vld [vmem:[#allocation3 + $0x80] ss:$16 sps:$4 sm:$0xff]  }
  0x19   :  { %324 = vmatpush1.bf16.msra.mxu0 %v819_v7  ;;  %397 = vmatpush1.bf16.msra.mxu1 %v820_v8  ;;  %v838_v20 = vld [vmem:[#allocation3 + $0x88] ss:$16 sps:$4 sm:$0xff]   ;;  %v839_v21 = vld [vmem:[#allocation3 + $0xa4] ss:$16 sps:$4 sm:$0xff]   ;;  %v841_v22 = vld [vmem:[#allocation3 + $0xac] ss:$16 sps:$4 sm:$0xff]  }
  0x1a   :  { %325 = vmatprep.subr.bf16.mxu0 %v821_v9  ;;  %398 = vmatprep.subr.bf16.mxu1 %v823_v10  ;;  %v843_v23 = vld [vmem:[#allocation3 + $0xa0] ss:$16 sps:$4 sm:$0xff]   ;;  %v844_v24 = vld [vmem:[#allocation3 + $0xa8] ss:$16 sps:$4 sm:$0xff]   ;;  %v845_v25 = vld [vmem:[#allocation3 + $0xc4] ss:$16 sps:$4 sm:$0xff]  }
  0x1b   :  { %v847_v26 = vld [vmem:[#allocation3 + $0xcc] ss:$16 sps:$4 sm:$0xff]   ;;  %v849_v27 = vld [vmem:[#allocation3 + $0xc0] ss:$16 sps:$4 sm:$0xff]   ;;  %v850_v28 = vld [vmem:[#allocation3 + $0xc8] ss:$16 sps:$4 sm:$0xff]  }
  0x1c   :  { %v851_v29 = vld [vmem:[#allocation3 + $0xe4] ss:$16 sps:$4 sm:$0xff]   ;;  %v853_v30 = vld [vmem:[#allocation3 + $0xec] ss:$16 sps:$4 sm:$0xff]   ;;  %v855_v31 = vld [vmem:[#allocation3 + $0xe0] ss:$16 sps:$4 sm:$0xff]  }
  0x1d   :  { %326 = vmatpush1.bf16.msra.mxu0 %v825_v11  ;;  %399 = vmatpush1.bf16.msra.mxu1 %v826_v12  ;;  %v856_v32 = vld [vmem:[#allocation3 + $0xe8] ss:$16 sps:$4 sm:$0xff]   ;;  %v857_v33 = vld [vmem:[%s1032_s0] sm:$0xff]   ;;  %v859_v35 = vld [vmem:[%s1032_s0 + $0x10] sm:$0xff]   ;;  %v569_v38 = vshrl.u32 %v568_v37, 7 }
  0x1e   :  { %327 = vmatprep.subr.bf16.mxu0 %v827_v13  ;;  %400 = vmatprep.subr.bf16.mxu1 %v829_v14  ;;  %v860_v36 = vld [vmem:[%s1032_s0 + $0x18] sm:$0xff]   ;;  %v566_v41 = vld [vmem:[%s1034_s2] sm:$0xf] }
  0x1f   :  { %v570_v39 = vsub.s32 0, %v569_v38  ;;  %v578_v40 = vsub.s32 2, %v569_v38  ;;  %v574_v42 = vsub.s32 1, %v569_v38  ;;  %v582_v43 = vsub.s32 3, %v569_v38 }
  0x21   :  { %328 = vmatpush1.bf16.msra.mxu0 %v831_v15  ;;  %401 = vmatpush1.bf16.msra.mxu1 %v832_v16  ;;  %v944_v44 = vrot.slane %v566_v41, %v570_v39  ;;  %v946_v45 = vrot.slane %v566_v41, %v578_v40  ;;  %v948_v46 = vrot.slane %v566_v41, %v574_v42 }
  0x22   :  { %329 = vmatprep.subr.bf16.mxu0 %v833_v17  ;;  %402 = vmatprep.subr.bf16.mxu1 %v835_v18  ;;  %v950_v47 = vrot.slane %v566_v41, %v582_v43 }
  0x25   :  { %330 = vmatpush1.bf16.msra.mxu0 %v837_v19  ;;  %403 = vmatpush1.bf16.msra.mxu1 %v838_v20 }
  0x26   :  { %331 = vmatprep.subr.bf16.mxu0 %v839_v21  ;;  %404 = vmatprep.subr.bf16.mxu1 %v841_v22 }
  0x29   :  { %332 = vmatpush1.bf16.msra.mxu0 %v843_v23  ;;  %405 = vmatpush1.bf16.msra.mxu1 %v844_v24 }
  0x2a   :  { %333 = vmatprep.subr.bf16.mxu0 %v845_v25  ;;  %406 = vmatprep.subr.bf16.mxu1 %v847_v26 }
  0x2d   :  { %334 = vmatpush1.bf16.msra.mxu0 %v849_v27  ;;  %407 = vmatpush1.bf16.msra.mxu1 %v850_v28 }
  0x2e   :  { %335 = vmatprep.subr.bf16.mxu0 %v851_v29  ;;  %408 = vmatprep.subr.bf16.mxu1 %v853_v30 }
  0x31   :  { %336 = vmatpush1.bf16.msra.mxu0 %v855_v31  ;;  %409 = vmatpush1.bf16.msra.mxu1 %v856_v32 }
  0x34   :  { %354 = vmatmul.mubr.bf16.vlgmr.msra.gmra.mrb[0].mxu0 %v857_v33  ;;  %427 = vmatmul.mubr.bf16.vlgmr.msra.gmra.mrb[0].mxu1 %v857_v33 }
  0x35   :  { %363 = vmatprep.mubr.bf16.mxu0 %v888_v0  ;;  %436 = vmatprep.mubr.bf16.mxu1 %v888_v0 }
  0x3c   :  { %364 = vmatmul.mubr.bf16.gmra.mrb[4].mxu0 %v858_v34  ;;  %437 = vmatmul.mubr.bf16.gmra.mrb[4].mxu1 %v858_v34 }
  0x3d   :  { %373 = vmatprep.mubr.bf16.mxu0 %v888_v0  ;;  %446 = vmatprep.mubr.bf16.mxu1 %v888_v0 }
  0x44   :  { %374 = vmatmul.mubr.bf16.gmra.mrb[8].mxu0 %v859_v35  ;;  %447 = vmatmul.mubr.bf16.gmra.mrb[8].mxu1 %v859_v35 }
  0x45   :  { %383 = vmatprep.mubr.bf16.mxu0 %v888_v0  ;;  %456 = vmatprep.mubr.bf16.mxu1 %v888_v0 }
  0x4c   :  { %384 = vmatmul.mubr.bf16.gmra.mrb[12].mxu0 %v860_v36  ;;  %457 = vmatmul.mubr.bf16.gmra.mrb[12].mxu1 %v860_v36 }
 0x107   :  { %v355_v48 = vpop.f32.mrb[0].mxu0  ;;  %v428_v49 = vpop.f32.mrb[0].mxu1 }
 0x108   :  { %v588_v50 = vadd.f32 %v944_v44, %v355_v48  ;;  %v590_v51 = vadd.f32 %v946_v45, %v428_v49  ;;  %v357_v52 = vpop.f32.mrb[1].mxu0  ;;  %v430_v53 = vpop.f32.mrb[1].mxu1 }
 0x109   :  { %v589_v54 = vadd.f32 %v948_v46, %v357_v52  ;;  %v591_v55 = vadd.f32 %v950_v47, %v430_v53  ;;  %v359_v56 = vpop.f32.mrb[2].mxu0  ;;  %v432_v57 = vpop.f32.mrb[2].mxu1 }
 0x10a   :  { %v592_v58 = vadd.f32 %v944_v44, %v359_v56  ;;  %v594_v59 = vadd.f32 %v946_v45, %v432_v57  ;;  %v361_v60 = vpop.f32.mrb[3].mxu0  ;;  %v434_v61 = vpop.f32.mrb[3].mxu1 }
 0x10b   :  { %v789_v62 = vpack.c.bf16 %v589_v54, %v588_v50  ;;  %v790_v63 = vpack.c.bf16 %v591_v55, %v590_v51  ;;  %v593_v0 = vadd.f32 %v948_v46, %v361_v60  ;;  %v595_v1 = vadd.f32 %v950_v47, %v434_v61 }
 0x10d   :  { %716 = vst [vmem:[%s1035_s3] sm:$0xff] %v789_v62  ;;  %717 = vst [vmem:[%s1035_s3 + $0x8] sm:$0xff] %v790_v63  ;;  %v791_v2 = vpack.c.bf16 %v593_v0, %v592_v58  ;;  %v792_v3 = vpack.c.bf16 %v595_v1, %v594_v59 }
 0x10f   :  { %718 = vst [vmem:[%s1035_s3 + $0x10] sm:$0xff] %v791_v2  ;;  %719 = vst [vmem:[%s1035_s3 + $0x18] sm:$0xff] %v792_v3  ;;  %v365_v4 = vpop.f32.mrb[4].mxu0  ;;  %v438_v5 = vpop.f32.mrb[4].mxu1 }
 0x110   :  { %v596_v6 = vadd.f32 %v944_v44, %v365_v4  ;;  %v598_v7 = vadd.f32 %v946_v45, %v438_v5  ;;  %v367_v8 = vpop.f32.mrb[5].mxu0  ;;  %v440_v9 = vpop.f32.mrb[5].mxu1 }
 0x111   :  { %v597_v10 = vadd.f32 %v948_v46, %v367_v8  ;;  %v599_v11 = vadd.f32 %v950_v47, %v440_v9  ;;  %v369_v12 = vpop.f32.mrb[6].mxu0  ;;  %v442_v13 = vpop.f32.mrb[6].mxu1 }
 0x112   :  { %v600_v14 = vadd.f32 %v944_v44, %v369_v12  ;;  %v602_v15 = vadd.f32 %v946_v45, %v442_v13  ;;  %v371_v16 = vpop.f32.mrb[7].mxu0  ;;  %v444_v17 = vpop.f32.mrb[7].mxu1 }
 0x113   :  { %v793_v18 = vpack.c.bf16 %v597_v10, %v596_v6  ;;  %v794_v19 = vpack.c.bf16 %v599_v11, %v598_v7  ;;  %v601_v20 = vadd.f32 %v948_v46, %v371_v16  ;;  %v603_v21 = vadd.f32 %v950_v47, %v444_v17 }
 0x115   :  { %720 = vst [vmem:[%s1035_s3 + $0x20] sm:$0xff] %v793_v18  ;;  %721 = vst [vmem:[%s1035_s3 + $0x28] sm:$0xff] %v794_v19  ;;  %v795_v22 = vpack.c.bf16 %v601_v20, %v600_v14  ;;  %v796_v23 = vpack.c.bf16 %v603_v21, %v602_v15 }
 0x117   :  { %722 = vst [vmem:[%s1035_s3 + $0x30] sm:$0xff] %v795_v22  ;;  %723 = vst [vmem:[%s1035_s3 + $0x38] sm:$0xff] %v796_v23  ;;  %v375_v24 = vpop.f32.mrb[8].mxu0  ;;  %v448_v25 = vpop.f32.mrb[8].mxu1 }
 0x118   :  { %v604_v26 = vadd.f32 %v944_v44, %v375_v24  ;;  %v606_v27 = vadd.f32 %v946_v45, %v448_v25  ;;  %v377_v28 = vpop.f32.mrb[9].mxu0  ;;  %v450_v29 = vpop.f32.mrb[9].mxu1 }
 0x119   :  { %v605_v30 = vadd.f32 %v948_v46, %v377_v28  ;;  %v607_v31 = vadd.f32 %v950_v47, %v450_v29  ;;  %v379_v32 = vpop.f32.mrb[10].mxu0  ;;  %v452_v33 = vpop.f32.mrb[10].mxu1 }
 0x11a   :  { %v608_v34 = vadd.f32 %v944_v44, %v379_v32  ;;  %v610_v35 = vadd.f32 %v946_v45, %v452_v33  ;;  %v381_v36 = vpop.f32.mrb[11].mxu0  ;;  %v454_v37 = vpop.f32.mrb[11].mxu1 }
 0x11b   :  { %v797_v38 = vpack.c.bf16 %v605_v30, %v604_v26  ;;  %v798_v39 = vpack.c.bf16 %v607_v31, %v606_v27  ;;  %v609_v40 = vadd.f32 %v948_v46, %v381_v36  ;;  %v611_v41 = vadd.f32 %v950_v47, %v454_v37 }
 0x11d   :  { %724 = vst [vmem:[%s1035_s3 + $0x40] sm:$0xff] %v797_v38  ;;  %725 = vst [vmem:[%s1035_s3 + $0x48] sm:$0xff] %v798_v39  ;;  %v799_v42 = vpack.c.bf16 %v609_v40, %v608_v34  ;;  %v800_v43 = vpack.c.bf16 %v611_v41, %v610_v35 }
 0x11f   :  { %726 = vst [vmem:[%s1035_s3 + $0x50] sm:$0xff] %v799_v42  ;;  %727 = vst [vmem:[%s1035_s3 + $0x58] sm:$0xff] %v800_v43  ;;  %v385_v48 = vpop.f32.mrb[12].mxu0  ;;  %v458_v49 = vpop.f32.mrb[12].mxu1 }
 0x120   :  { %v612_v50 = vadd.f32 %v944_v44, %v385_v48  ;;  %v614_v51 = vadd.f32 %v946_v45, %v458_v49  ;;  %v387_v52 = vpop.f32.mrb[13].mxu0  ;;  %v460_v53 = vpop.f32.mrb[13].mxu1 }
 0x121   :  { %v613_v54 = vadd.f32 %v948_v46, %v387_v52  ;;  %v615_v55 = vadd.f32 %v950_v47, %v460_v53  ;;  %v389_v56 = vpop.f32.mrb[14].mxu0  ;;  %v462_v57 = vpop.f32.mrb[14].mxu1 }
 0x122   :  { %v616_v58 = vadd.f32 %v944_v44, %v389_v56  ;;  %v618_v59 = vadd.f32 %v946_v45, %v462_v57  ;;  %v391_v60 = vpop.f32.mrb[15].mxu0  ;;  %v464_v61 = vpop.f32.mrb[15].mxu1 }
 0x123   :  { %v801_v62 = vpack.c.bf16 %v613_v54, %v612_v50  ;;  %v802_v63 = vpack.c.bf16 %v615_v55, %v614_v51  ;;  %v617_v0 = vadd.f32 %v948_v46, %v391_v60  ;;  %v619_v1 = vadd.f32 %v950_v47, %v464_v61 }
 0x125   :  { %728 = vst [vmem:[%s1035_s3 + $0x60] sm:$0xff] %v801_v62  ;;  %729 = vst [vmem:[%s1035_s3 + $0x68] sm:$0xff] %v802_v63  ;;  %v803_v2 = vpack.c.bf16 %v617_v0, %v616_v58  ;;  %v804_v44 = vpack.c.bf16 %v619_v1, %v618_v59 }
 0x127   :  { %730 = vst [vmem:[%s1035_s3 + $0x70] sm:$0xff] %v803_v2  ;;  %731 = vst [vmem:[%s1035_s3 + $0x78] sm:$0xff] %v804_v44 }
 0x128   :  { %736 = vsyncpa [#allocation4], 1 }

</bundles_post_ra>
